<compile_context>
chip_gen: v7x
topology: tpu7x:2x2x1
jax: 0.10.0
libtpu: 0.0.40
codegen_flags: <defaults>
</compile_context>

<pallas_src>
import functools

import jax
import jax.numpy as jnp
from jax.experimental import pallas as pl
from jax.experimental.pallas import tpu as pltpu

LANE = 128


def _round_up(a: int, b: int) -> int:
    return ((a + b - 1) // b) * b


def _vmem_capacity_bytes() -> int:
    try:
        return int(pltpu.get_tpu_info().vmem_capacity_bytes)
    except Exception:
        return 64 << 20  # conservative: v7x per-TensorCore VMEM


def _epilogue_dtype():
    try:
        kind = jax.devices()[0].device_kind.lower()
    except Exception:
        kind = ""
    # v6e / v7x have a bf16 VALU; v5e (and unknown chips) keep the f32 path.
    if "v6" in kind or "v7" in kind:
        return jnp.bfloat16
    return jnp.float32


def mlp_kernel(x_ref, w1_ref, b1_ref, w2_ref, b2_ref, w3_ref, b3_ref, o_ref,
               *, compute_dtype, epilogue_dtype):
    x = x_ref[...]  # (tile, D) in the caller's dtype (f32 here)

    # layer 0: Linear + ReLU  (bf16 MXU operands, f32 accumulate; epilogue in
    # bf16 on v6e/v7x, f32 on v5e)
    acc = jnp.dot(x.astype(compute_dtype), w1_ref[...],
                  preferred_element_type=jnp.float32)
    h = jnp.maximum(acc.astype(epilogue_dtype) + b1_ref[...].astype(epilogue_dtype),
                    0).astype(compute_dtype)

    # layer 1: Linear + ReLU
    acc = jnp.dot(h, w2_ref[...], preferred_element_type=jnp.float32)
    h = jnp.maximum(acc.astype(epilogue_dtype) + b2_ref[...].astype(epilogue_dtype),
                    0).astype(compute_dtype)

    # layer 2: Linear (no activation); final bias + identity residual in f32
    # (dropout p=0.0 -> identity).
    y = jnp.dot(h, w3_ref[...], preferred_element_type=jnp.float32) + b3_ref[...]
    o_ref[...] = (x.astype(jnp.float32) + y).astype(o_ref.dtype)


def mlp_reference_exact(x, params, compute_dtype=jnp.bfloat16,
                        epilogue_dtype=jnp.float32):
    """Replicates the kernel's arithmetic path exactly."""
    cd, ed = compute_dtype, epilogue_dtype
    acc = jnp.dot(x.astype(cd), params["w1"].astype(cd),
                  preferred_element_type=jnp.float32)
    h = jnp.maximum(acc.astype(ed) + params["b1"].astype(ed), 0).astype(cd)
    acc = jnp.dot(h, params["w2"].astype(cd), preferred_element_type=jnp.float32)
    h = jnp.maximum(acc.astype(ed) + params["b2"].astype(ed), 0).astype(cd)
    y = jnp.dot(h, params["w3"].astype(cd),
                preferred_element_type=jnp.float32) + params["b3"]
    return x.astype(jnp.float32) + y


def mlp_reference_f32(x, params):
    h = jnp.maximum(x @ params["w1"] + params["b1"], 0.0)
    h = jnp.maximum(h @ params["w2"] + params["b2"], 0.0)
    y = h @ params["w3"] + params["b3"]
    return x + y


def mlp_pallas(x, params, *, tile_rows=1024, compute_dtype=jnp.bfloat16,
               epilogue_dtype=None):
    """x: (N, D_in). params: w1,b1,w2,b2,w3,b3 with weights stored as (in, out)."""
    N, D_in = x.shape
    H = params["w1"].shape[1]
    D_out = params["w3"].shape[1]
    assert D_in == D_out, "add_identity requires input_dim == output_dim"
    if epilogue_dtype is None:
        epilogue_dtype = _epilogue_dtype()

    cd = jnp.dtype(compute_dtype)
    x_bytes = jnp.dtype(x.dtype).itemsize

    # ---- lane-align feature dims (no-op at real FFN dims of 256/512) -------
    Dp = _round_up(D_in, LANE)
    Hp = _round_up(H, LANE)
    pad_d = Dp - D_in
    pad_h = Hp - H

    w1 = jnp.pad(params["w1"], ((0, pad_d), (0, pad_h))).astype(compute_dtype)
    w2 = jnp.pad(params["w2"], ((0, pad_h), (0, pad_h))).astype(compute_dtype)
    w3 = jnp.pad(params["w3"], ((0, pad_h), (0, pad_d))).astype(compute_dtype)
    b1 = jnp.pad(params["b1"], ((0, 0), (0, pad_h))).astype(jnp.float32)
    b2 = jnp.pad(params["b2"], ((0, 0), (0, pad_h))).astype(jnp.float32)
    b3 = jnp.pad(params["b3"], ((0, 0), (0, pad_d))).astype(jnp.float32)
    x_p = jnp.pad(x, ((0, 0), (0, pad_d))) if pad_d else x

    # single-buffered resident weight/bias bytes
    weight_bytes = (w1.size + w2.size + w3.size) * cd.itemsize \
        + (b1.size + b2.size + b3.size) * 4

    def footprint(tile):
        io = 2 * tile * (Dp + Dp) * x_bytes                       # dbl-buffered x/out tiles
        inter = tile * Hp * (4 + cd.itemsize) + tile * max(Hp, Dp) * 4  # f32 acc + casts
        return io + weight_bytes + inter

    # Generation-aware usable-VMEM budget (~48 MiB on v7x, ~100 MiB on v5e/v6e).
    vmem_cap = min(_vmem_capacity_bytes() - (16 << 20), 100 << 20)
    vmem_cap = max(vmem_cap, 24 << 20)

    # ---- row tile -----------------------------------------------------------
    tile = max(8, min(_round_up(tile_rows, 8), _round_up(N, 8)))
    if N >= 16:
        # guarantee >= 2 grid steps so both v7x TensorCores get work
        tile = min(tile, _round_up(pl.cdiv(N, 2), 8))
    while tile > 8 and footprint(tile) > vmem_cap:
        tile = max(8, _round_up(tile // 2, 8))

    if footprint(tile) > vmem_cap:
        # Resident-weight design cannot fit even a minimal tile -> plain XLA.
        # TODO(synk): H-tiled ("arbitrary" reduction axis) Pallas fallback.
        return mlp_reference_exact(x, params, compute_dtype, epilogue_dtype)

    grid = pl.cdiv(N, tile)

    vmem_est = footprint(tile)
    vmem_limit = None
    if vmem_est > (10 << 20):  # v5e's default scoped limit is only 16 MiB
        vmem_limit = int(min(max(2 * vmem_est, 32 << 20), vmem_cap))

    flops = 2 * N * (Dp * Hp + Hp * Hp + Hp * Dp)
    bytes_accessed = int(N * 2 * Dp * x_bytes + weight_bytes)
    cost = pl.CostEstimate(flops=flops, transcendentals=0,
                           bytes_accessed=bytes_accessed)

    kernel = functools.partial(mlp_kernel, compute_dtype=compute_dtype,
                               epilogue_dtype=epilogue_dtype)

    def build(single_buffer_weights):
        def resident(shape):
            n = len(shape)
            index_map = lambda i: (0,) * n
            if single_buffer_weights:
                # Constant-index blocks: one DMA, one buffer.
                return pl.BlockSpec(shape, index_map, pipeline_mode=pl.Buffered(1))
            return pl.BlockSpec(shape, index_map)

        return pl.pallas_call(
            kernel,
            out_shape=jax.ShapeDtypeStruct((N, Dp), x.dtype),
            grid_spec=pltpu.PrefetchScalarGridSpec(
                num_scalar_prefetch=0,
                grid=(grid,),
                in_specs=[
                    pl.BlockSpec((tile, Dp), lambda i: (i, 0)),  # x row tile
                    resident((Dp, Hp)),   # w1
                    resident((1, Hp)),    # b1
                    resident((Hp, Hp)),   # w2
                    resident((1, Hp)),    # b2
                    resident((Hp, Dp)),   # w3
                    resident((1, Dp)),    # b3
                ],
                out_specs=pl.BlockSpec((tile, Dp), lambda i: (i, 0)),
            ),
            compiler_params=pltpu.CompilerParams(
                dimension_semantics=("parallel",),
                vmem_limit_bytes=vmem_limit,
            ),
            cost_estimate=cost,
        )

    args = (x_p, w1, b1, w2, b2, w3, b3)
    try:
        out = build(True)(*args)
    except Exception:
        # Installed JAX rejects single-buffered BlockSpecs -> default buffering.
        out = build(False)(*args)

    return out if pad_d == 0 else out[:, :D_out]


def init_params(key, input_dim, hidden_dim, output_dim, num_layers=3):
    """Deterministic init mimicking nn.Linear default (uniform +/- 1/sqrt(fan_in))."""
    assert num_layers == 3  # this script fuses exactly 3 layers
    dims = [(input_dim, hidden_dim), (hidden_dim, hidden_dim), (hidden_dim, output_dim)]
    params = {}
    keys = jax.random.split(key, 2 * len(dims))
    for li, (fan_in, fan_out) in enumerate(dims):
        bound = 1.0 / (fan_in ** 0.5)
        w = jax.random.uniform(keys[2 * li], (fan_in, fan_out),
                               minval=-bound, maxval=bound, dtype=jnp.float32)
        b = jax.random.uniform(keys[2 * li + 1], (1, fan_out),
                               minval=-bound, maxval=bound, dtype=jnp.float32)
        params[f"w{li + 1}"] = w
        params[f"b{li + 1}"] = b
    return params


if __name__ == "__main__":
    key = jax.random.PRNGKey(0)
    k_x, k_p = jax.random.split(key)

    batch, seq = 2, 8
    input_dim = output_dim = 32
    hidden_dim = 64

    x = jax.random.normal(k_x, (batch, seq, input_dim), dtype=jnp.float32)
    params = init_params(k_p, input_dim, hidden_dim, output_dim, num_layers=3)

    x_flat = x.reshape(batch * seq, input_dim)
    out_flat = mlp_pallas(x_flat, params)  # 2 grid steps of 8 rows at this size
    out = out_flat.reshape(batch, seq, output_dim)
    jax.block_until_ready(out)

    # Tight check against a reference that uses the identical arithmetic path.
    ep = _epilogue_dtype()
    ref = mlp_reference_exact(x_flat, params, jnp.bfloat16, ep)
    ref = ref.reshape(batch, seq, output_dim)
    assert jnp.allclose(out, ref, atol=5e-3, rtol=5e-3), "mismatch vs exact-math reference"

    # Loose sanity check against pure-f32 module semantics (bf16 roundoff only).
    ref32 = mlp_reference_f32(x_flat, params).reshape(batch, seq, output_dim)
    assert jnp.allclose(out, ref32, atol=1e-1, rtol=1e-1), "mismatch vs f32 reference"

    print("KERNEL_OK")
</pallas_src>

<mosaic_0001>
module attributes {stable_mosaic.version = 11 : i64} {
  func.func @mlp_kernel(%arg0: i32, %arg1: memref<8x128xf32, #tpu.memory_space<vmem>>, %arg2: memref<128x128xbf16, #tpu.memory_space<vmem>>, %arg3: memref<1x128xf32, #tpu.memory_space<vmem>>, %arg4: memref<128x128xbf16, #tpu.memory_space<vmem>>, %arg5: memref<1x128xf32, #tpu.memory_space<vmem>>, %arg6: memref<128x128xbf16, #tpu.memory_space<vmem>>, %arg7: memref<1x128xf32, #tpu.memory_space<vmem>>, %arg8: memref<8x128xf32, #tpu.memory_space<vmem>>) attributes {dimension_semantics = [#tpu.dimension_semantics<parallel>], iteration_bounds = array<i64: 2>, scalar_prefetch = 0 : i64, scratch_operands = 0 : i64, tpu.core_type = #tpu.core_type<tc>, window_params = [{transform_indices = @transform_0, window_bounds = array<i64: 8, 128>}, {pipeline_mode = #tpu.pipeline_mode<synchronous>, transform_indices = @transform_1, window_bounds = array<i64: 128, 128>}, {pipeline_mode = #tpu.pipeline_mode<synchronous>, transform_indices = @transform_2, window_bounds = array<i64: 1, 128>}, {pipeline_mode = #tpu.pipeline_mode<synchronous>, transform_indices = @transform_3, window_bounds = array<i64: 128, 128>}, {pipeline_mode = #tpu.pipeline_mode<synchronous>, transform_indices = @transform_4, window_bounds = array<i64: 1, 128>}, {pipeline_mode = #tpu.pipeline_mode<synchronous>, transform_indices = @transform_5, window_bounds = array<i64: 128, 128>}, {pipeline_mode = #tpu.pipeline_mode<synchronous>, transform_indices = @transform_6, window_bounds = array<i64: 1, 128>}, {transform_indices = @transform_7, window_bounds = array<i64: 8, 128>}]} {
    %c0 = arith.constant 0 : index
    %c0_0 = arith.constant 0 : index
    %0 = vector.load %arg1[%c0, %c0_0] : memref<8x128xf32, #tpu.memory_space<vmem>>, vector<8x128xf32>
    %1 = arith.truncf %0 : vector<8x128xf32> to vector<8x128xbf16>
    %c0_1 = arith.constant 0 : index
    %c0_2 = arith.constant 0 : index
    %2 = vector.load %arg2[%c0_1, %c0_2] : memref<128x128xbf16, #tpu.memory_space<vmem>>, vector<128x128xbf16>
    %cst = arith.constant dense<0.000000e+00> : vector<8x128xf32>
    %3 = tpu.matmul %1, %2, %cst {dimension_numbers = #tpu.dot_dimension_numbers<[1], [0], [0], [1], [0, 0, 1, 1], [], []>} : vector<8x128xbf16>, vector<128x128xbf16>, vector<8x128xf32> -> vector<8x128xf32>
    %c0_3 = arith.constant 0 : index
    %c0_4 = arith.constant 0 : index
    %4 = vector.load %arg3[%c0_3, %c0_4] : memref<1x128xf32, #tpu.memory_space<vmem>>, vector<1x128xf32>
    %5 = vector.broadcast %4 : vector<1x128xf32> to vector<8x128xf32>
    %6 = arith.addf %3, %5 : vector<8x128xf32>
    %cst_5 = arith.constant 0.000000e+00 : f32
    %7 = vector.broadcast %cst_5 : f32 to vector<8x128xf32>
    %8 = arith.maximumf %6, %7 : vector<8x128xf32>
    %9 = arith.truncf %8 : vector<8x128xf32> to vector<8x128xbf16>
    %c0_6 = arith.constant 0 : index
    %c0_7 = arith.constant 0 : index
    %10 = vector.load %arg4[%c0_6, %c0_7] : memref<128x128xbf16, #tpu.memory_space<vmem>>, vector<128x128xbf16>
    %cst_8 = arith.constant dense<0.000000e+00> : vector<8x128xf32>
    %11 = tpu.matmul %9, %10, %cst_8 {dimension_numbers = #tpu.dot_dimension_numbers<[1], [0], [0], [1], [0, 0, 1, 1], [], []>} : vector<8x128xbf16>, vector<128x128xbf16>, vector<8x128xf32> -> vector<8x128xf32>
    %c0_9 = arith.constant 0 : index
    %c0_10 = arith.constant 0 : index
    %12 = vector.load %arg5[%c0_9, %c0_10] : memref<1x128xf32, #tpu.memory_space<vmem>>, vector<1x128xf32>
    %13 = vector.broadcast %12 : vector<1x128xf32> to vector<8x128xf32>
    %14 = arith.addf %11, %13 : vector<8x128xf32>
    %cst_11 = arith.constant 0.000000e+00 : f32
    %15 = vector.broadcast %cst_11 : f32 to vector<8x128xf32>
    %16 = arith.maximumf %14, %15 : vector<8x128xf32>
    %17 = arith.truncf %16 : vector<8x128xf32> to vector<8x128xbf16>
    %c0_12 = arith.constant 0 : index
    %c0_13 = arith.constant 0 : index
    %18 = vector.load %arg6[%c0_12, %c0_13] : memref<128x128xbf16, #tpu.memory_space<vmem>>, vector<128x128xbf16>
    %cst_14 = arith.constant dense<0.000000e+00> : vector<8x128xf32>
    %19 = tpu.matmul %17, %18, %cst_14 {dimension_numbers = #tpu.dot_dimension_numbers<[1], [0], [0], [1], [0, 0, 1, 1], [], []>} : vector<8x128xbf16>, vector<128x128xbf16>, vector<8x128xf32> -> vector<8x128xf32>
    %c0_15 = arith.constant 0 : index
    %c0_16 = arith.constant 0 : index
    %20 = vector.load %arg7[%c0_15, %c0_16] : memref<1x128xf32, #tpu.memory_space<vmem>>, vector<1x128xf32>
    %21 = vector.broadcast %20 : vector<1x128xf32> to vector<8x128xf32>
    %22 = arith.addf %19, %21 : vector<8x128xf32>
    %23 = arith.addf %0, %22 : vector<8x128xf32>
    %c0_17 = arith.constant 0 : index
    %c0_18 = arith.constant 0 : index
    %24 = vector.load %arg8[%c0_17, %c0_18] : memref<8x128xf32, #tpu.memory_space<vmem>>, vector<8x128xf32>
    tpu.vector_store %arg8[%c0_17, %c0_18], %23 {strides = array<i32>} : memref<8x128xf32, #tpu.memory_space<vmem>>, vector<8x128xf32>,
    return
  }
  func.func @transform_0(%arg0: i32) -> (i32, i32) {
    %c0_i32 = arith.constant 0 : i32
    %c0_i32_0 = arith.constant 0 : i32
    return %arg0, %c0_i32 : i32, i32
  }
  func.func @transform_1(%arg0: i32) -> (i32, i32) {
    %c0_i32 = arith.constant 0 : i32
    %c0_i32_0 = arith.constant 0 : i32
    %c0_i32_1 = arith.constant 0 : i32
    return %c0_i32, %c0_i32_0 : i32, i32
  }
  func.func @transform_2(%arg0: i32) -> (i32, i32) {
    %c0_i32 = arith.constant 0 : i32
    %c0_i32_0 = arith.constant 0 : i32
    %c0_i32_1 = arith.constant 0 : i32
    return %c0_i32, %c0_i32_0 : i32, i32
  }
  func.func @transform_3(%arg0: i32) -> (i32, i32) {
    %c0_i32 = arith.constant 0 : i32
    %c0_i32_0 = arith.constant 0 : i32
    %c0_i32_1 = arith.constant 0 : i32
    return %c0_i32, %c0_i32_0 : i32, i32
  }
  func.func @transform_4(%arg0: i32) -> (i32, i32) {
    %c0_i32 = arith.constant 0 : i32
    %c0_i32_0 = arith.constant 0 : i32
    %c0_i32_1 = arith.constant 0 : i32
    return %c0_i32, %c0_i32_0 : i32, i32
  }
  func.func @transform_5(%arg0: i32) -> (i32, i32) {
    %c0_i32 = arith.constant 0 : i32
    %c0_i32_0 = arith.constant 0 : i32
    %c0_i32_1 = arith.constant 0 : i32
    return %c0_i32, %c0_i32_0 : i32, i32
  }
  func.func @transform_6(%arg0: i32) -> (i32, i32) {
    %c0_i32 = arith.constant 0 : i32
    %c0_i32_0 = arith.constant 0 : i32
    %c0_i32_1 = arith.constant 0 : i32
    return %c0_i32, %c0_i32_0 : i32, i32
  }
  func.func @transform_7(%arg0: i32) -> (i32, i32) {
    %c0_i32 = arith.constant 0 : i32
    %c0_i32_0 = arith.constant 0 : i32
    return %arg0, %c0_i32 : i32, i32
  }
}

module attributes {stable_mosaic.version = 11 : i64} {
  func.func @mlp_kernel(%arg0: i32, %arg1: memref<8x128xf32, #tpu.memory_space<vmem>>, %arg2: memref<128x128xbf16, #tpu.memory_space<vmem>>, %arg3: memref<1x128xf32, #tpu.memory_space<vmem>>, %arg4: memref<128x128xbf16, #tpu.memory_space<vmem>>, %arg5: memref<1x128xf32, #tpu.memory_space<vmem>>, %arg6: memref<128x128xbf16, #tpu.memory_space<vmem>>, %arg7: memref<1x128xf32, #tpu.memory_space<vmem>>, %arg8: memref<8x128xf32, #tpu.memory_space<vmem>>) attributes {dimension_semantics = [#tpu.dimension_semantics<parallel>], iteration_bounds = array<i64: 2>, scalar_prefetch = 0 : i64, scratch_operands = 0 : i64, tpu.core_type = #tpu.core_type<tc>, window_params = [{transform_indices = @transform_0, window_bounds = array<i64: 8, 128>}, {pipeline_mode = #tpu.pipeline_mode<synchronous>, transform_indices = @transform_1, window_bounds = array<i64: 128, 128>}, {pipeline_mode = #tpu.pipeline_mode<synchronous>, transform_indices = @transform_2, window_bounds = array<i64: 1, 128>}, {pipeline_mode = #tpu.pipeline_mode<synchronous>, transform_indices = @transform_3, window_bounds = array<i64: 128, 128>}, {pipeline_mode = #tpu.pipeline_mode<synchronous>, transform_indices = @transform_4, window_bounds = array<i64: 1, 128>}, {pipeline_mode = #tpu.pipeline_mode<synchronous>, transform_indices = @transform_5, window_bounds = array<i64: 128, 128>}, {pipeline_mode = #tpu.pipeline_mode<synchronous>, transform_indices = @transform_6, window_bounds = array<i64: 1, 128>}, {transform_indices = @transform_7, window_bounds = array<i64: 8, 128>}]} {
    %c0 = arith.constant 0 : index
    %c0_0 = arith.constant 0 : index
    %0 = vector.load %arg1[%c0, %c0_0] : memref<8x128xf32, #tpu.memory_space<vmem>>, vector<8x128xf32>
    %1 = arith.truncf %0 : vector<8x128xf32> to vector<8x128xbf16>
    %c0_1 = arith.constant 0 : index
    %c0_2 = arith.constant 0 : index
    %2 = vector.load %arg2[%c0_1, %c0_2] : memref<128x128xbf16, #tpu.memory_space<vmem>>, vector<128x128xbf16>
    %cst = arith.constant dense<0.000000e+00> : vector<8x128xf32>
    %3 = tpu.matmul %1, %2, %cst {dimension_numbers = #tpu.dot_dimension_numbers<[1], [0], [0], [1], [0, 0, 1, 1], [], []>} : vector<8x128xbf16>, vector<128x128xbf16>, vector<8x128xf32> -> vector<8x128xf32>
    %c0_3 = arith.constant 0 : index
    %c0_4 = arith.constant 0 : index
    %4 = vector.load %arg3[%c0_3, %c0_4] : memref<1x128xf32, #tpu.memory_space<vmem>>, vector<1x128xf32>
    %5 = vector.broadcast %4 : vector<1x128xf32> to vector<8x128xf32>
    %6 = arith.addf %3, %5 : vector<8x128xf32>
    %cst_5 = arith.constant 0.000000e+00 : f32
    %7 = vector.broadcast %cst_5 : f32 to vector<8x128xf32>
    %8 = arith.maximumf %6, %7 : vector<8x128xf32>
    %9 = arith.truncf %8 : vector<8x128xf32> to vector<8x128xbf16>
    %c0_6 = arith.constant 0 : index
    %c0_7 = arith.constant 0 : index
    %10 = vector.load %arg4[%c0_6, %c0_7] : memref<128x128xbf16, #tpu.memory_space<vmem>>, vector<128x128xbf16>
    %cst_8 = arith.constant dense<0.000000e+00> : vector<8x128xf32>
    %11 = tpu.matmul %9, %10, %cst_8 {dimension_numbers = #tpu.dot_dimension_numbers<[1], [0], [0], [1], [0, 0, 1, 1], [], []>} : vector<8x128xbf16>, vector<128x128xbf16>, vector<8x128xf32> -> vector<8x128xf32>
    %c0_9 = arith.constant 0 : index
    %c0_10 = arith.constant 0 : index
    %12 = vector.load %arg5[%c0_9, %c0_10] : memref<1x128xf32, #tpu.memory_space<vmem>>, vector<1x128xf32>
    %13 = vector.broadcast %12 : vector<1x128xf32> to vector<8x128xf32>
    %14 = arith.addf %11, %13 : vector<8x128xf32>
    %cst_11 = arith.constant 0.000000e+00 : f32
    %15 = vector.broadcast %cst_11 : f32 to vector<8x128xf32>
    %16 = arith.maximumf %14, %15 : vector<8x128xf32>
    %17 = arith.truncf %16 : vector<8x128xf32> to vector<8x128xbf16>
    %c0_12 = arith.constant 0 : index
    %c0_13 = arith.constant 0 : index
    %18 = vector.load %arg6[%c0_12, %c0_13] : memref<128x128xbf16, #tpu.memory_space<vmem>>, vector<128x128xbf16>
    %cst_14 = arith.constant dense<0.000000e+00> : vector<8x128xf32>
    %19 = tpu.matmul %17, %18, %cst_14 {dimension_numbers = #tpu.dot_dimension_numbers<[1], [0], [0], [1], [0, 0, 1, 1], [], []>} : vector<8x128xbf16>, vector<128x128xbf16>, vector<8x128xf32> -> vector<8x128xf32>
    %c0_15 = arith.constant 0 : index
    %c0_16 = arith.constant 0 : index
    %20 = vector.load %arg7[%c0_15, %c0_16] : memref<1x128xf32, #tpu.memory_space<vmem>>, vector<1x128xf32>
    %21 = vector.broadcast %20 : vector<1x128xf32> to vector<8x128xf32>
    %22 = arith.addf %19, %21 : vector<8x128xf32>
    %23 = arith.addf %0, %22 : vector<8x128xf32>
    %c0_17 = arith.constant 0 : index
    %c0_18 = arith.constant 0 : index
    %24 = vector.load %arg8[%c0_17, %c0_18] : memref<8x128xf32, #tpu.memory_space<vmem>>, vector<8x128xf32>
    tpu.vector_store %arg8[%c0_17, %c0_18], %23 {strides = array<i32>} : memref<8x128xf32, #tpu.memory_space<vmem>>, vector<8x128xf32>,
    return
  }
  func.func @transform_0(%arg0: i32) -> (i32, i32) {
    %c0_i32 = arith.constant 0 : i32
    %c0_i32_0 = arith.constant 0 : i32
    return %arg0, %c0_i32 : i32, i32
  }
  func.func @transform_1(%arg0: i32) -> (i32, i32) {
    %c0_i32 = arith.constant 0 : i32
    %c0_i32_0 = arith.constant 0 : i32
    %c0_i32_1 = arith.constant 0 : i32
    return %c0_i32, %c0_i32_0 : i32, i32
  }
  func.func @transform_2(%arg0: i32) -> (i32, i32) {
    %c0_i32 = arith.constant 0 : i32
    %c0_i32_0 = arith.constant 0 : i32
    %c0_i32_1 = arith.constant 0 : i32
    return %c0_i32, %c0_i32_0 : i32, i32
  }
  func.func @transform_3(%arg0: i32) -> (i32, i32) {
    %c0_i32 = arith.constant 0 : i32
    %c0_i32_0 = arith.constant 0 : i32
    %c0_i32_1 = arith.constant 0 : i32
    return %c0_i32, %c0_i32_0 : i32, i32
  }
  func.func @transform_4(%arg0: i32) -> (i32, i32) {
    %c0_i32 = arith.constant 0 : i32
    %c0_i32_0 = arith.constant 0 : i32
    %c0_i32_1 = arith.constant 0 : i32
    return %c0_i32, %c0_i32_0 : i32, i32
  }
  func.func @transform_5(%arg0: i32) -> (i32, i32) {
    %c0_i32 = arith.constant 0 : i32
    %c0_i32_0 = arith.constant 0 : i32
    %c0_i32_1 = arith.constant 0 : i32
    return %c0_i32, %c0_i32_0 : i32, i32
  }
  func.func @transform_6(%arg0: i32) -> (i32, i32) {
    %c0_i32 = arith.constant 0 : i32
    %c0_i32_0 = arith.constant 0 : i32
    %c0_i32_1 = arith.constant 0 : i32
    return %c0_i32, %c0_i32_0 : i32, i32
  }
  func.func @transform_7(%arg0: i32) -> (i32, i32) {
    %c0_i32 = arith.constant 0 : i32
    %c0_i32_0 = arith.constant 0 : i32
    return %arg0, %c0_i32 : i32, i32
  }
}

</mosaic_0001>

<bundles_post_ra>
// kernel: tpu_custom_call.1
= control target key start
LH: loop header
LB: loop body
LE: loop exit
PB: predicated region body
PF: predicated region fallthrough
CT: control target
= control target key end

     0   :  { %12 = vsyncpa [#allocation3], 0  ;;  %s1583_s0 = inlined_call_operand.hbm [shape: f32[16,128], index: 0, kind: input, shape index: {}]   ;;  %s1584_s1 = inlined_call_operand.hbm [shape: bf16[128,128], index: 1, kind: input, shape index: {}]   ;;  %s1585_s2 = inlined_call_operand.vmem [shape: f32[1,128], index: 2, kind: input, shape index: {}]   ;;  %s1586_s3 = inlined_call_operand.hbm [shape: bf16[128,128], index: 3, kind: input, shape index: {}]   ;;  %s1587_s4 = inlined_call_operand.vmem [shape: f32[1,128], index: 4, kind: input, shape index: {}]   ;;  %s1588_s5 = inlined_call_operand.hbm [shape: bf16[128,128], index: 5, kind: input, shape index: {}]   ;;  %s1589_s6 = inlined_call_operand.vmem [shape: f32[1,128], index: 6, kind: input, shape index: {}]   ;;  %s1590_s7 = inlined_call_operand.hbm [shape: f32[16,128], index: 7, kind: output, shape index: {}]  }
   0x1   :  { %14 = vsyncpa [#allocation3 + $0x1], 0 }
   0x2   :  { %15 = vsyncpa [#allocation6], 0 }
   0x3   :  { %16 = vsyncpa [#allocation9], 0 }
   0x4   :  { %17 = vsyncpa [#allocation4], 0 }
   0x5   :  { %19 = vsyncpa [#allocation4 + $0x1], 0  ;;  %s1269_s24 = smov 0   ;;  %s1271_s25 = smov 0  }
   0x6   :  { %s1273_s26 = smov 0   ;;  %s1275_s27 = smov 0  }
   0x7 LB: > { %s1290_s28 = sadd.s32 4294967295, %s1218_s27   ;;  %s793_s29 = sadd.s32 4294967294, %s1218_s27   ;;  %s1218_s27 = sphi %s1275_s27, %s1616_s27   ;;  %s1214_s26 = sphi %s1273_s26, %s1615_s26   ;;  %s1210_s25 = sphi %s1271_s25, %s1614_s25   ;;  %s1206_s24 = sphi %s1269_s24, %s1613_s24  }
   0x8   : > { %p45_p0 = scmp.ne.s32.totalorder %s1210_s25, %s1206_s24  ;;  %p1591_p1 = scmp.eq.s32.totalorder %s1290_s28, 0 }
   0x9   : > { %p201_p3 = scmp.eq.s32.totalorder %s793_s29, 1  ;;  %p794_p5 = scmp.ge.s32.totalorder %s1218_s27, 1 }
   0xa   : > { %p1299_p4 = por %p1591_p1, %p45_p0  ;;  %p208_p7 = scmp.lt.s32.totalorder %s1218_s27, 3 }
   0xb   : > { %p1304_p6 = por %p201_p3, %p45_p0  ;;  %s1220_s10 = smov [#allocation5]  }
   0xc   : > { %s1595_s30 = scalar_select %p1299_p4, 1, 0 }
   0xd   : > { %s1596_s8 = scalar_select %p1304_p6, 1, 0 }
   0xe   : > { %p1309_p8 = pnand %p794_p5, %p208_p7  ;;  %s220_s11 = sshll.u32 %s1220_s10, 4  ;;  %s1313_s11 = int_to_ptr.vmem [resolvable:$true] %s220_s11 }
   0xf   : > { %1597 = sst [smem:[#allocation15_spill]] %s1596_s8  ;;  %s1221_s13 = smov [#allocation7]  }
  0x10   : > { %s1598_s9 = scalar_select %p1309_p8, 1, 0 }
  0x11   : > { %p941_p9 = pneg %p1309_p8  ;;  %s236_s14 = sshll.u32 %s1221_s13, 4  ;;  %s1324_s14 = int_to_ptr.vmem [resolvable:$true] %s236_s14 }
  0x12   : > { %s1222_s15 = smov [#allocation8]   ;;  %s1030_s19 = scalar_lea.hbm %s1584_s1, 1024 }
  0x13   : > { %p1320_p11 = pnand %p941_p9, %p1591_p1  ;;  %s1326_s16 = sshll.u32 %s1222_s15, 4  ;;  %s253_s16 = int_to_ptr.vmem [resolvable:$true] %s1326_s16 }
  0x14   : > { %p1031_p12 = scmp.ne.s32.totalorder %s1584_s1, %s1030_s19  ;;  %p1037_p5 = scmp.lt.u32.totalorder %s1030_s19, %s1584_s1 }
  0x15   : > { %p1336_p13 = pneg %p1320_p11 }
  0x17   : > { %p1033_p0 = pnand %p1336_p13, %p1031_p12 }
  0x19   : > { %p1034_p3 = pneg %p1033_p0 }
  0x1b   : > { %p1039_p7 = pnand %p1037_p5, %p1034_p3 }
  0x1d   : > { %1042 = shalt.err (!%p1039_p7)
}
  0x1e   : > { %s1043_s10 = scalar_lea.vmem %s1313_s11, 1024  ;;  %p1051_p2 = scmp.lt.s32.totalorder %s1313_s11, %s1313_s11 }
  0x1f   : > { %p1044_p9 = scmp.ne.s32.totalorder %s1313_s11, %s1043_s10  ;;  %p1052_p6 = scmp.lt.s32.totalorder %s1043_s10, %s1043_s10 }
  0x21   : > { %p1046_p10 = pnand %p1044_p9, %p1336_p13  ;;  %p1053_p12 = por %p1052_p6, %p1051_p2 }
  0x23   : > { %p1047_p1 = pneg %p1046_p10 }
  0x25   : > { %p1054_p0 = pnand %p1053_p12, %p1047_p1 }
  0x27   : > { %1057 = shalt.err (!%p1054_p0)
}
  0x28   : > { %s1223_s13 = smov 64   ;;  %s1224_s15 = smov 4  }
  0x29   : > { %944 = dma.hbm_to_vmem [thread:$0]  (!%p1320_p11), %s1584_s1, 1024, %s1313_s11, [#allocation6], %s1223_s13, %s1223_s13, %s1224_s15  }
  0x2a   : > { %s1058_s21 = scalar_lea.hbm %s1586_s3, 1024 }
  0x2b   : > { %p1059_p1 = scmp.ne.s32.totalorder %s1586_s3, %s1058_s21  ;;  %p1065_p10 = scmp.lt.u32.totalorder %s1058_s21, %s1586_s3 }
  0x2d   : > { %p1061_p2 = pnand %p1059_p1, %p1336_p13 }
  0x2f   : > { %p1062_p6 = pneg %p1061_p2 }
  0x31   : > { %p1067_p3 = pnand %p1065_p10, %p1062_p6 }
  0x33   : > { %1070 = shalt.err (!%p1067_p3)
}
  0x34   : > { %s1071_s11 = scalar_lea.vmem %s1324_s14, 1024  ;;  %p1079_p12 = scmp.lt.s32.totalorder %s1324_s14, %s1324_s14 }
  0x35   : > { %p1072_p5 = scmp.ne.s32.totalorder %s1324_s14, %s1071_s11  ;;  %p1080_p0 = scmp.lt.s32.totalorder %s1071_s11, %s1071_s11 }
  0x37   : > { %p1074_p7 = pnand %p1072_p5, %p1336_p13  ;;  %p1081_p1 = por %p1080_p0, %p1079_p12 }
  0x39   : > { %p1075_p9 = pneg %p1074_p7 }
  0x3b   : > { %p1082_p2 = pnand %p1081_p1, %p1075_p9 }
  0x3d   : > { %1085 = shalt.err (!%p1082_p2)
}
  0x3e   : > { %947 = dma.hbm_to_vmem [thread:$0]  (!%p1320_p11), %s1586_s3, 1024, %s1324_s14, [#allocation6], %s1223_s13, %s1223_s13, %s1224_s15  }
  0x3f   : > { %s1086_s20 = scalar_lea.hbm %s1588_s5, 1024 }
  0x40   : > { %p1087_p6 = scmp.ne.s32.totalorder %s1588_s5, %s1086_s20  ;;  %p1093_p5 = scmp.lt.u32.totalorder %s1086_s20, %s1588_s5 }
  0x42   : > { %p1089_p10 = pnand %p1087_p6, %p1336_p13 }
  0x44   : > { %p1090_p3 = pneg %p1089_p10 }
  0x46   : > { %p1095_p7 = pnand %p1093_p5, %p1090_p3 }
  0x48   : > { %1098 = shalt.err (!%p1095_p7)
}
  0x49   : > { %s1099_s11 = scalar_lea.vmem %s253_s16, 1024  ;;  %p1107_p1 = scmp.lt.s32.totalorder %s253_s16, %s253_s16 }
  0x4a   : > { %p1100_p9 = scmp.ne.s32.totalorder %s253_s16, %s1099_s11  ;;  %p1108_p2 = scmp.lt.s32.totalorder %s1099_s11, %s1099_s11 }
  0x4c   : > { %p1102_p12 = pnand %p1100_p9, %p1336_p13  ;;  %p1109_p4 = por %p1108_p2, %p1107_p1 }
  0x4e   : > { %p1103_p0 = pneg %p1102_p12 }
  0x50   : > { %p1110_p8 = pnand %p1109_p4, %p1103_p0 }
  0x52   : > { %1113 = shalt.err (!%p1110_p8)
}
  0x53   : > { %950 = dma.hbm_to_vmem [thread:$0]  (!%p1320_p11), %s1588_s5, 1024, %s253_s16, [#allocation9], %s1223_s13, %s1223_s13, %s1224_s15  }
  0x54   : > { %s1409_s22 = sadd.s32 1, %s1218_s27   ;;  %s32_s17 = sadd.s32 1, %s1214_s26 }
  0x55   : > { %s29_s12 = ssub.s32 %s1218_s27, %s1409_s22  ;;  %p39_p8 = scmp.ne.s32.totalorder %s1214_s26, %s1210_s25 }
  0x56   : > { %p30_p4 = scmp.eq.s32.totalorder %s29_s12, 0  ;;  %p40_p13 = scmp.eq.s32.totalorder %s1218_s27, 0 }
  0x57   : > { %p962_p6 = scmp.lt.s32.totalorder %s1218_s27, 2  ;;  %p1601_p3 = scmp.eq.s32.totalorder %s1290_s28, 1 }
  0x58   : > { %s1419_s18 = scalar_select %p30_p4, %s1214_s26, %s32_s17  }
  0x59   : > { %p41_p10 = por %p40_p13, %p39_p8  ;;  %p1423_p5 = por %p1601_p3, %p39_p8 }
  0x5a   : > { %s269_s20 = sand.u32 1, %s1214_s26   ;;  %s800_s21 = sshll.u32 %s1218_s27, 7 }
  0x5b   : > { %s799_s16 = sshll.u32 %s269_s20, 3  ;;  %s1432_s23 = scalar_lea.hbm %s1583_s0, %s800_s21 }
  0x5c   : > { %s273_s29 = scalar_lea.vmem [#allocation2], %s799_s16  ;;  %p1434_p11 = pnand %p962_p6, %p41_p10 }
  0x5d   : > { %s280_s10 = sshll.u32 %s273_s29, 4  ;;  %s270_s14 = scalar_lea.sflag [#allocation3], %s269_s20  ;;  %s1438_s10 = int_to_ptr.vmem [resolvable:$true] %s280_s10 }
  0x5e   : > { %s1114_s8 = scalar_lea.hbm %s1432_s23, 128  ;;  %p1116_p9 = pneg %p1434_p11 }
  0x5f   : > { %p1115_p7 = scmp.ne.s32.totalorder %s1432_s23, %s1114_s8  ;;  %s1119_s21 = scalar_lea.hbm %s1583_s0, 256 }
  0x60   : > { %p1120_p1 = scmp.lt.u32.totalorder %s1432_s23, %s1583_s0  ;;  %p1121_p2 = scmp.lt.u32.totalorder %s1119_s21, %s1114_s8 }
  0x61   : > { %p1117_p12 = pnand %p1116_p9, %p1115_p7  ;;  %p1123_p8 = scmp.lt.u32.totalorder %s1114_s8, %s1432_s23 }
  0x62   : > { %p1122_p4 = por %p1121_p2, %p1120_p1 }
  0x63   : > { %p1118_p0 = pneg %p1117_p12 }
  0x64   : > { %p1124_p13 = por %p1123_p8, %p1122_p4 }
  0x66   : > { %p1125_p6 = pnand %p1124_p13, %p1118_p0 }
  0x68   : > { %1128 = shalt.err (!%p1125_p6)
}
  0x69   : > { %s1129_s20 = scalar_lea.vmem %s1438_s10, 128  ;;  %s1225_s15 = smov [#allocation2]  }
  0x6a   : > { %p1130_p10 = scmp.ne.s32.totalorder %s1438_s10, %s1129_s20  ;;  %s1134_s29 = sshll.u32 %s1225_s15, 4  ;;  %s1135_s29 = int_to_ptr.vmem [resolvable:$false] %s1134_s29 }
  0x6b   : > { %s1136_s12 = scalar_lea.vmem %s1135_s29, 256  ;;  %p1137_p12 = scmp.lt.s32.totalorder %s1438_s10, %s1135_s29 }
  0x6c   : > { %p1132_p3 = pnand %p1130_p10, %p1116_p9  ;;  %p1138_p1 = scmp.lt.s32.totalorder %s1136_s12, %s1129_s20 }
  0x6e   : > { %p1133_p7 = pneg %p1132_p3  ;;  %p1139_p2 = por %p1138_p1, %p1137_p12 }
  0x70   : > { %p1140_p4 = pnand %p1139_p2, %p1133_p7 }
  0x72   : > { %1143 = shalt.err (!%p1140_p4)
}
  0x73   : > { %954 = dma.hbm_to_vmem [thread:$0]  (!%p1434_p11), %s1432_s23, 128, %s1438_s10, %s270_s14  }
  0x74   : > { %p1604_p0 = scmp.ne.s32.totalorder %s1598_s9, 0 }
  0x75   : > { %s1468_s8 = sand.u32 (!%p1604_p0), 1, %s1210_s25   ;;  %p1605_p9 = scmp.ne.s32.totalorder (!%p1604_p0), %s1595_s30, 0 }
  0x76   : > { %289 = sbr.rel (%p1604_p0) target bundleno = 833 (0x341), region = 48  ;;  %s802_s17 = sshll.u32 (!%p1604_p0), %s1468_s8, 3 }
  0x77   : > { %s292_s21 = scalar_lea.sflag (!%p1604_p0), [#allocation3], %s1468_s8  ;;  %s1474_s16 = scalar_lea.vmem (!%p1604_p0), [#allocation2], %s802_s17 }
  0x7d   : > { %1189 = dma.done.wait (%p1605_p9), %s292_s21, 128  }
  0x7e   : > { %1191 = vsyncadd (%p1605_p9), %s292_s21, 4294967168  ;;  %p1606_p11 = scmp.eq.s32.totalorder %s1290_s28, 0 }
  0x80   : > { %1193 = dma.done.wait (%p1606_p11), [#allocation6], 2048   ;;  %p1607_p8 = pmov %p1606_p11 }
  0x82   : > { %1195 = vsyncadd (%p1607_p8), [#allocation6], 4294965248  ;;  %p1608_p13 = pmov %p1607_p8 }
  0x83   : > { %p1609_p6 = pmov %p1607_p8 }
  0x84   : > { %1197 = dma.done.wait (%p1608_p13), [#allocation9], 1024  }
  0x85   : > { %1199 = vsyncadd (%p1609_p6), [#allocation9], 4294966272  ;;  %v1226_v0 = vmov 0.0   ;;  %vm1227_vm0 = vmmov 0   ;;  %v1006_v1 = vld [vmem:[#allocation5] sm:$0xff]   ;;  %v1007_v2 = vld [vmem:[#allocation5 + $0x8] sm:$0xff]  }
  0x86   : > { %865 = vmatprep.subr.bf16.mxu0 %v1226_v0  ;;  %881 = vmatprep.mubr.msk.bf16.mxu0 %vm1227_vm0, %v1226_v0  ;;  %v1008_v3 = vld [vmem:[#allocation5 + $0x10] sm:$0xff]   ;;  %v1014_v4 = vld [vmem:[#allocation7] sm:$0xff]   ;;  %v1009_v5 = vld [vmem:[#allocation5 + $0x18] sm:$0xff]   ;;  %s835_s13 = sshll.u32 %s1290_s28, 7  ;;  %s337_s20 = scalar_lea.vmem [#allocation10], %s802_s17 }
  0x87   : > { %885 = vmatprep.subr.bf16.mxu1 %v1226_v0  ;;  %901 = vmatprep.mubr.msk.bf16.mxu1 %vm1227_vm0, %v1226_v0  ;;  %v1015_v6 = vld [vmem:[#allocation7 + $0x8] sm:$0xff]   ;;  %v1010_v7 = vld [vmem:[#allocation5 + $0x20] sm:$0xff]   ;;  %v1016_v8 = vld [vmem:[#allocation7 + $0x10] sm:$0xff]   ;;  %s694_s15 = sshll.u32 %s337_s20, 4  ;;  %s1539_s21 = scalar_lea.hbm %s1590_s7, %s835_s13  ;;  %s1541_s15 = int_to_ptr.vmem [resolvable:$true] %s694_s15 }
  0x88   : > { %866 = vmatpush3.bf16.msra.mxu0 %v1006_v1  ;;  %886 = vmatpush3.bf16.msra.mxu1 %v1014_v4  ;;  %v1011_v9 = vld [vmem:[#allocation5 + $0x28] sm:$0xff]   ;;  %v1017_v10 = vld [vmem:[#allocation7 + $0x18] sm:$0xff]   ;;  %v1012_v11 = vld [vmem:[#allocation5 + $0x30] sm:$0xff]   ;;  %s681_s28 = scalar_lea.sflag [#allocation4], %s1468_s8  ;;  %s1144_s17 = scalar_lea.vmem %s1541_s15, 128 }
  0x89   : > { %867 = vmatprep.subr.bf16.mxu0 %v1226_v0  ;;  %887 = vmatprep.subr.bf16.mxu1 %v1226_v0  ;;  %v1018_v12 = vld [vmem:[#allocation7 + $0x20] sm:$0xff]   ;;  %v1013_v13 = vld [vmem:[#allocation5 + $0x38] sm:$0xff]   ;;  %v1019_v15 = vld [vmem:[#allocation7 + $0x28] sm:$0xff]   ;;  %p1145_p10 = scmp.ne.s32.totalorder %s1541_s15, %s1144_s17 }
  0x8a   : > { %v1505_v14 = vld [vmem:[%s1474_s16] sm:$0xff]  ;;  %v1022_v19 = vld [vmem:[#allocation8] sm:$0xff]   ;;  %v1023_v20 = vld [vmem:[#allocation8 + $0x8] sm:$0xff]   ;;  %s1228_s16 = smov [#allocation10]  }
  0x8b   : > { %v340_v16 = vpack.c.bf16 %v1505_v14, %v1505_v14  ;;  %v1020_v17 = vld [vmem:[#allocation7 + $0x30] sm:$0xff]   ;;  %v1021_v18 = vld [vmem:[#allocation7 + $0x38] sm:$0xff]   ;;  %v1026_v23 = vld [vmem:[#allocation8 + $0x20] sm:$0xff]   ;;  %p1146_p3 = pnand %p1145_p10, %p1423_p5  ;;  %s1148_s30 = sshll.u32 %s1228_s16, 4  ;;  %s1149_s30 = int_to_ptr.vmem [resolvable:$false] %s1148_s30 }
  0x8c   : > { %868 = vmatpush3.bf16.msra.mxu0 %v1007_v2  ;;  %888 = vmatpush3.bf16.msra.mxu1 %v1015_v6  ;;  %v1024_v21 = vld [vmem:[#allocation8 + $0x10] sm:$0xff]   ;;  %v1025_v22 = vld [vmem:[#allocation8 + $0x18] sm:$0xff]   ;;  %v1027_v24 = vld [vmem:[#allocation8 + $0x28] sm:$0xff]   ;;  %s1150_s9 = scalar_lea.vmem %s1149_s30, 256  ;;  %p1151_p12 = scmp.lt.s32.totalorder %s1541_s15, %s1149_s30 }
  0x8d   : > { %869 = vmatprep.subr.bf16.mxu0 %v1226_v0  ;;  %889 = vmatprep.subr.bf16.mxu1 %v1226_v0  ;;  %v807_v25 = vld [vmem:[%s1585_s2] ss:$0 sm:$0xff]  ;;  %v1029_v34 = vld [vmem:[#allocation8 + $0x38] sm:$0xff]   ;;  %p1147_p7 = pneg %p1146_p3  ;;  %p1152_p1 = scmp.lt.s32.totalorder %s1150_s9, %s1144_s17 }
  0x8e   : > { %v1028_v33 = vld [vmem:[#allocation8 + $0x30] sm:$0xff]  }
  0x8f   : > { %v816_v35 = vld [vmem:[%s1587_s4] ss:$0 sm:$0xff]  ;;  %p1153_p2 = por %p1152_p1, %p1151_p12 }
  0x90   : > { %870 = vmatpush3.bf16.msra.mxu0 %v1008_v3  ;;  %890 = vmatpush3.bf16.msra.mxu1 %v1016_v8  ;;  %v825_v43 = vld [vmem:[%s1589_s6] ss:$0 sm:$0xff] }
  0x91   : > { %871 = vmatprep.subr.bf16.mxu0 %v1226_v0  ;;  %891 = vmatprep.subr.bf16.mxu1 %v1226_v0  ;;  %p1154_p4 = pnand %p1153_p2, %p1147_p7 }
  0x94   : > { %872 = vmatpush3.bf16.msra.mxu0 %v1009_v5  ;;  %892 = vmatpush3.bf16.msra.mxu1 %v1017_v10 }
  0x95   : > { %873 = vmatprep.subr.bf16.mxu0 %v1226_v0  ;;  %893 = vmatprep.subr.bf16.mxu1 %v1226_v0 }
  0x98   : > { %874 = vmatpush3.bf16.msra.mxu0 %v1010_v7  ;;  %894 = vmatpush3.bf16.msra.mxu1 %v1018_v12 }
  0x99   : > { %875 = vmatprep.subr.bf16.mxu0 %v1226_v0  ;;  %895 = vmatprep.subr.bf16.mxu1 %v1226_v0 }
  0x9c   : > { %876 = vmatpush3.bf16.msra.mxu0 %v1011_v9  ;;  %896 = vmatpush3.bf16.msra.mxu1 %v1019_v15 }
  0x9d   : > { %877 = vmatprep.subr.bf16.mxu0 %v1226_v0  ;;  %897 = vmatprep.subr.bf16.mxu1 %v1226_v0 }
  0xa0   : > { %878 = vmatpush3.bf16.msra.mxu0 %v1012_v11  ;;  %898 = vmatpush3.bf16.msra.mxu1 %v1020_v17 }
  0xa1   : > { %879 = vmatprep.subr.bf16.mxu0 %v1226_v0  ;;  %899 = vmatprep.subr.bf16.mxu1 %v1226_v0 }
  0xa4   : > { %880 = vmatpush3.bf16.msra.mxu0 %v1013_v13  ;;  %900 = vmatpush3.bf16.msra.mxu1 %v1021_v18 }
  0xa5   : > { %905 = vmatprep.subr.bf16.mxu0 %v1226_v0 }
  0xa7   : > { %882 = vmatmul.mubr.bf16.vlgmr.msra.gmra.mrb[0].mxu0 %v340_v16 }
  0xa8   : > { %921 = vmatprep.mubr.msk.bf16.mxu0 %vm1227_vm0, %v1226_v0  ;;  %906 = vmatpush3.bf16.msra.mxu0 %v1022_v19 }
  0xa9   : > { %907 = vmatprep.subr.bf16.mxu0 %v1226_v0 }
  0xac   : > { %908 = vmatpush3.bf16.msra.mxu0 %v1023_v20 }
  0xad   : > { %909 = vmatprep.subr.bf16.mxu0 %v1226_v0 }
  0xb0   : > { %910 = vmatpush3.bf16.msra.mxu0 %v1024_v21 }
  0xb1   : > { %911 = vmatprep.subr.bf16.mxu0 %v1226_v0 }
  0xb4   : > { %912 = vmatpush3.bf16.msra.mxu0 %v1025_v22 }
  0xb5   : > { %913 = vmatprep.subr.bf16.mxu0 %v1226_v0 }
  0xb8   : > { %914 = vmatpush3.bf16.msra.mxu0 %v1026_v23 }
  0xb9   : > { %915 = vmatprep.subr.bf16.mxu0 %v1226_v0 }
  0xbc   : > { %916 = vmatpush3.bf16.msra.mxu0 %v1027_v24 }
  0xbd   : > { %917 = vmatprep.subr.bf16.mxu0 %v1226_v0 }
  0xc0   : > { %918 = vmatpush3.bf16.msra.mxu0 %v1028_v33 }
  0xc1   : > { %919 = vmatprep.subr.bf16.mxu0 %v1226_v0 }
  0xc4   : > { %920 = vmatpush3.bf16.msra.mxu0 %v1029_v34 }
 0x17a   : > { %v446_v26 = vpop.f32.mrb[0].mxu0 }
 0x17b   : > { %v447_v27 = vadd.f32 %v807_v25, %v446_v26  ;;  %v883_v28 = vpop.f32.mrb[1].mxu0 }
 0x17c   : > { %v449_v29 = vpop.f32.mrb[2].mxu0 }
 0x17d   : > { %v452_v30 = vmax.f32 %v447_v27, 0.0  ;;  %v884_v31 = vpop.f32.mrb[3].mxu0 }
 0x17f   : > { %v453_v32 = vpack.c.bf16 %v452_v30, %v452_v30 }
 0x181   : > { %902 = vmatmul.mubr.bf16.vlgmr.msra.gmra.mrb[0].mxu1 %v453_v32 }
 0x254   : > { %v559_v36 = vpop.f32.mrb[0].mxu1 }
 0x255   : > { %v560_v37 = vadd.f32 %v816_v35, %v559_v36  ;;  %v903_v38 = vpop.f32.mrb[1].mxu1 }
 0x256   : > { %v562_v39 = vpop.f32.mrb[2].mxu1 }
 0x257   : > { %v565_v40 = vmax.f32 %v560_v37, 0.0  ;;  %v904_v41 = vpop.f32.mrb[3].mxu1 }
 0x259   : > { %v566_v42 = vpack.c.bf16 %v565_v40, %v565_v40 }
 0x25b   : > { %922 = vmatmul.mubr.bf16.vlgmr.msra.gmra.mrb[4].mxu0 %v566_v42 }
 0x32e   : > { %v672_v44 = vpop.f32.mrb[4].mxu0 }
 0x32f   : > { %v673_v45 = vadd.f32 %v825_v43, %v672_v44  ;;  %v923_v46 = vpop.f32.mrb[5].mxu0 }
 0x330   : > { %v675_v47 = vpop.f32.mrb[6].mxu0 }
 0x331   : > { %v678_v48 = vadd.f32 %v673_v45, %v1505_v14  ;;  %v924_v49 = vpop.f32.mrb[7].mxu0 }
 0x333   : > { %679 = vst [vmem:[%s337_s20] sm:$0xff] %v678_v48 }
 0x334   : > { %1157 = shalt.err (!%p1154_p4)
}
 0x335   : > { %s1158_s8 = scalar_lea.hbm %s1539_s21, 128  ;;  %s1162_s11 = scalar_lea.hbm %s1590_s7, 256 }
 0x336   : > { %p1159_p0 = scmp.ne.s32.totalorder %s1539_s21, %s1158_s8  ;;  %p1163_p8 = scmp.lt.u32.totalorder %s1539_s21, %s1590_s7 }
 0x337   : > { %p1164_p13 = scmp.lt.u32.totalorder %s1162_s11, %s1158_s8  ;;  %p1166_p10 = scmp.lt.u32.totalorder %s1158_s8, %s1539_s21 }
 0x338   : > { %p1160_p9 = pnand %p1159_p0, %p1423_p5 }
 0x339   : > { %p1165_p6 = por %p1164_p13, %p1163_p8 }
 0x33a   : > { %p1161_p11 = pneg %p1160_p9 }
 0x33b   : > { %p1167_p3 = por %p1166_p10, %p1165_p6 }
 0x33d   : > { %p1168_p7 = pnand %p1167_p3, %p1161_p11 }
 0x33f   : > { %1171 = shalt.err (!%p1168_p7)
}
 0x340   : > { %939 = dma.vmem_to_hbm [thread:$0]  (%p1423_p5), %s1541_s15, 128, %s1539_s21, %s681_s28  }
 0x341 PF: > { %s1610_s20 = sld [smem:[#allocation15_spill]]  ;;  %s706_s29 = sand.u32 1, %s1206_s24  }
 0x342   : > { %p1612_p1 = scmp.ge.s32.totalorder %s1218_s27, 2  ;;  %s707_s12 = scalar_lea.sflag [#allocation4], %s706_s29 }
 0x347   : > { %p1611_p12 = scmp.ne.s32.totalorder %s1610_s20, 0 }
 0x349   : > { %p956_p2 = pnand %p1612_p1, %p1611_p12 }
 0x34b   : > { %1201 = dma.done.wait (!%p956_p2), %s707_s12, 128  }
 0x34c   : > { %1203 = vsyncadd (!%p956_p2), %s707_s12, 4294967168  ;;  %p22_p4 = scmp.ge.s32.totalorder %s1409_s22, 4   ;;  %s1613_s24 = smov %s1210_s25 }
 0x34d   : > { %s1614_s25 = smov %s1214_s26  ;;  %s1615_s26 = smov %s1419_s18 }
 0x34e   : > { %s1616_s27 = smov %s1409_s22  ;;  %24 = sbr.rel (!%p22_p4) target bundleno = 7 (0x7), region = 105 }
 0x355   :  { %712 = vsyncpa [#allocation3], 1 }
 0x356   :  { %714 = vsyncpa [#allocation3 + $0x1], 1 }
 0x357   :  { %715 = vsyncpa [#allocation6], 1 }
 0x358   :  { %716 = vsyncpa [#allocation9], 1 }
 0x359   :  { %717 = vsyncpa [#allocation4], 1 }
 0x35a   :  { %719 = vsyncpa [#allocation4 + $0x1], 1 }

// kernel: tpu_custom_call.1
= control target key start
LH: loop header
LB: loop body
LE: loop exit
PB: predicated region body
PF: predicated region fallthrough
CT: control target
= control target key end

     0   :  { %12 = vsyncpa [#allocation3], 0  ;;  %s1583_s0 = inlined_call_operand.hbm [shape: f32[16,128], index: 0, kind: input, shape index: {}]   ;;  %s1584_s1 = inlined_call_operand.hbm [shape: bf16[128,128], index: 1, kind: input, shape index: {}]   ;;  %s1585_s2 = inlined_call_operand.vmem [shape: f32[1,128], index: 2, kind: input, shape index: {}]   ;;  %s1586_s3 = inlined_call_operand.hbm [shape: bf16[128,128], index: 3, kind: input, shape index: {}]   ;;  %s1587_s4 = inlined_call_operand.vmem [shape: f32[1,128], index: 4, kind: input, shape index: {}]   ;;  %s1588_s5 = inlined_call_operand.hbm [shape: bf16[128,128], index: 5, kind: input, shape index: {}]   ;;  %s1589_s6 = inlined_call_operand.vmem [shape: f32[1,128], index: 6, kind: input, shape index: {}]   ;;  %s1590_s7 = inlined_call_operand.hbm [shape: f32[16,128], index: 7, kind: output, shape index: {}]  }
   0x1   :  { %14 = vsyncpa [#allocation3 + $0x1], 0 }
   0x2   :  { %15 = vsyncpa [#allocation6], 0 }
   0x3   :  { %16 = vsyncpa [#allocation9], 0 }
   0x4   :  { %17 = vsyncpa [#allocation4], 0 }
   0x5   :  { %19 = vsyncpa [#allocation4 + $0x1], 0  ;;  %s1269_s24 = smov 0   ;;  %s1271_s25 = smov 0  }
   0x6   :  { %s1273_s26 = smov 0   ;;  %s1275_s27 = smov 0  }
   0x7 LB: > { %s1290_s28 = sadd.s32 4294967295, %s1218_s27   ;;  %s793_s29 = sadd.s32 4294967294, %s1218_s27   ;;  %s1218_s27 = sphi %s1275_s27, %s1616_s27   ;;  %s1214_s26 = sphi %s1273_s26, %s1615_s26   ;;  %s1210_s25 = sphi %s1271_s25, %s1614_s25   ;;  %s1206_s24 = sphi %s1269_s24, %s1613_s24  }
   0x8   : > { %p45_p0 = scmp.ne.s32.totalorder %s1210_s25, %s1206_s24  ;;  %p1591_p1 = scmp.eq.s32.totalorder %s1290_s28, 0 }
   0x9   : > { %p201_p3 = scmp.eq.s32.totalorder %s793_s29, 1  ;;  %p794_p5 = scmp.ge.s32.totalorder %s1218_s27, 1 }
   0xa   : > { %p1299_p4 = por %p1591_p1, %p45_p0  ;;  %p208_p7 = scmp.lt.s32.totalorder %s1218_s27, 3 }
   0xb   : > { %p1304_p6 = por %p201_p3, %p45_p0  ;;  %s1220_s10 = smov [#allocation5]  }
   0xc   : > { %s1595_s30 = scalar_select %p1299_p4, 1, 0 }
   0xd   : > { %s1596_s8 = scalar_select %p1304_p6, 1, 0 }
   0xe   : > { %p1309_p8 = pnand %p794_p5, %p208_p7  ;;  %s220_s11 = sshll.u32 %s1220_s10, 4  ;;  %s1313_s11 = int_to_ptr.vmem [resolvable:$true] %s220_s11 }
   0xf   : > { %1597 = sst [smem:[#allocation15_spill]] %s1596_s8  ;;  %s1221_s13 = smov [#allocation7]  }
  0x10   : > { %s1598_s9 = scalar_select %p1309_p8, 1, 0 }
  0x11   : > { %p941_p9 = pneg %p1309_p8  ;;  %s236_s14 = sshll.u32 %s1221_s13, 4  ;;  %s1324_s14 = int_to_ptr.vmem [resolvable:$true] %s236_s14 }
  0x12   : > { %s1222_s15 = smov [#allocation8]   ;;  %s1030_s19 = scalar_lea.hbm %s1584_s1, 1024 }
  0x13   : > { %p1320_p11 = pnand %p941_p9, %p1591_p1  ;;  %s1326_s16 = sshll.u32 %s1222_s15, 4  ;;  %s253_s16 = int_to_ptr.vmem [resolvable:$true] %s1326_s16 }
  0x14   : > { %p1031_p12 = scmp.ne.s32.totalorder %s1584_s1, %s1030_s19  ;;  %p1037_p5 = scmp.lt.u32.totalorder %s1030_s19, %s1584_s1 }
  0x15   : > { %p1336_p13 = pneg %p1320_p11 }
  0x17   : > { %p1033_p0 = pnand %p1336_p13, %p1031_p12 }
  0x19   : > { %p1034_p3 = pneg %p1033_p0 }
  0x1b   : > { %p1039_p7 = pnand %p1037_p5, %p1034_p3 }
  0x1d   : > { %1042 = shalt.err (!%p1039_p7)
}
  0x1e   : > { %s1043_s10 = scalar_lea.vmem %s1313_s11, 1024  ;;  %p1051_p2 = scmp.lt.s32.totalorder %s1313_s11, %s1313_s11 }
  0x1f   : > { %p1044_p9 = scmp.ne.s32.totalorder %s1313_s11, %s1043_s10  ;;  %p1052_p6 = scmp.lt.s32.totalorder %s1043_s10, %s1043_s10 }
  0x21   : > { %p1046_p10 = pnand %p1044_p9, %p1336_p13  ;;  %p1053_p12 = por %p1052_p6, %p1051_p2 }
  0x23   : > { %p1047_p1 = pneg %p1046_p10 }
  0x25   : > { %p1054_p0 = pnand %p1053_p12, %p1047_p1 }
  0x27   : > { %1057 = shalt.err (!%p1054_p0)
}
  0x28   : > { %s1223_s13 = smov 64   ;;  %s1224_s15 = smov 4  }
  0x29   : > { %944 = dma.hbm_to_vmem [thread:$0]  (!%p1320_p11), %s1584_s1, 1024, %s1313_s11, [#allocation6], %s1223_s13, %s1223_s13, %s1224_s15  }
  0x2a   : > { %s1058_s21 = scalar_lea.hbm %s1586_s3, 1024 }
  0x2b   : > { %p1059_p1 = scmp.ne.s32.totalorder %s1586_s3, %s1058_s21  ;;  %p1065_p10 = scmp.lt.u32.totalorder %s1058_s21, %s1586_s3 }
  0x2d   : > { %p1061_p2 = pnand %p1059_p1, %p1336_p13 }
  0x2f   : > { %p1062_p6 = pneg %p1061_p2 }
  0x31   : > { %p1067_p3 = pnand %p1065_p10, %p1062_p6 }
  0x33   : > { %1070 = shalt.err (!%p1067_p3)
}
  0x34   : > { %s1071_s11 = scalar_lea.vmem %s1324_s14, 1024  ;;  %p1079_p12 = scmp.lt.s32.totalorder %s1324_s14, %s1324_s14 }
  0x35   : > { %p1072_p5 = scmp.ne.s32.totalorder %s1324_s14, %s1071_s11  ;;  %p1080_p0 = scmp.lt.s32.totalorder %s1071_s11, %s1071_s11 }
  0x37   : > { %p1074_p7 = pnand %p1072_p5, %p1336_p13  ;;  %p1081_p1 = por %p1080_p0, %p1079_p12 }
  0x39   : > { %p1075_p9 = pneg %p1074_p7 }
  0x3b   : > { %p1082_p2 = pnand %p1081_p1, %p1075_p9 }
  0x3d   : > { %1085 = shalt.err (!%p1082_p2)
}
  0x3e   : > { %947 = dma.hbm_to_vmem [thread:$0]  (!%p1320_p11), %s1586_s3, 1024, %s1324_s14, [#allocation6], %s1223_s13, %s1223_s13, %s1224_s15  }
  0x3f   : > { %s1086_s20 = scalar_lea.hbm %s1588_s5, 1024 }
  0x40   : > { %p1087_p6 = scmp.ne.s32.totalorder %s1588_s5, %s1086_s20  ;;  %p1093_p5 = scmp.lt.u32.totalorder %s1086_s20, %s1588_s5 }
  0x42   : > { %p1089_p10 = pnand %p1087_p6, %p1336_p13 }
  0x44   : > { %p1090_p3 = pneg %p1089_p10 }
  0x46   : > { %p1095_p7 = pnand %p1093_p5, %p1090_p3 }
  0x48   : > { %1098 = shalt.err (!%p1095_p7)
}
  0x49   : > { %s1099_s11 = scalar_lea.vmem %s253_s16, 1024  ;;  %p1107_p1 = scmp.lt.s32.totalorder %s253_s16, %s253_s16 }
  0x4a   : > { %p1100_p9 = scmp.ne.s32.totalorder %s253_s16, %s1099_s11  ;;  %p1108_p2 = scmp.lt.s32.totalorder %s1099_s11, %s1099_s11 }
  0x4c   : > { %p1102_p12 = pnand %p1100_p9, %p1336_p13  ;;  %p1109_p4 = por %p1108_p2, %p1107_p1 }
  0x4e   : > { %p1103_p0 = pneg %p1102_p12 }
  0x50   : > { %p1110_p8 = pnand %p1109_p4, %p1103_p0 }
  0x52   : > { %1113 = shalt.err (!%p1110_p8)
}
  0x53   : > { %950 = dma.hbm_to_vmem [thread:$0]  (!%p1320_p11), %s1588_s5, 1024, %s253_s16, [#allocation9], %s1223_s13, %s1223_s13, %s1224_s15  }
  0x54   : > { %s1409_s22 = sadd.s32 1, %s1218_s27   ;;  %s32_s17 = sadd.s32 1, %s1214_s26 }
  0x55   : > { %s29_s12 = ssub.s32 %s1218_s27, %s1409_s22  ;;  %p39_p8 = scmp.ne.s32.totalorder %s1214_s26, %s1210_s25 }
  0x56   : > { %p30_p4 = scmp.eq.s32.totalorder %s29_s12, 0  ;;  %p40_p13 = scmp.eq.s32.totalorder %s1218_s27, 0 }
  0x57   : > { %p962_p6 = scmp.lt.s32.totalorder %s1218_s27, 2  ;;  %p1601_p3 = scmp.eq.s32.totalorder %s1290_s28, 1 }
  0x58   : > { %s1419_s18 = scalar_select %p30_p4, %s1214_s26, %s32_s17  }
  0x59   : > { %p41_p10 = por %p40_p13, %p39_p8  ;;  %p1423_p5 = por %p1601_p3, %p39_p8 }
  0x5a   : > { %s269_s20 = sand.u32 1, %s1214_s26   ;;  %s800_s21 = sshll.u32 %s1218_s27, 7 }
  0x5b   : > { %s799_s16 = sshll.u32 %s269_s20, 3  ;;  %s1432_s23 = scalar_lea.hbm %s1583_s0, %s800_s21 }
  0x5c   : > { %s273_s29 = scalar_lea.vmem [#allocation2], %s799_s16  ;;  %p1434_p11 = pnand %p962_p6, %p41_p10 }
  0x5d   : > { %s280_s10 = sshll.u32 %s273_s29, 4  ;;  %s270_s14 = scalar_lea.sflag [#allocation3], %s269_s20  ;;  %s1438_s10 = int_to_ptr.vmem [resolvable:$true] %s280_s10 }
  0x5e   : > { %s1114_s8 = scalar_lea.hbm %s1432_s23, 128  ;;  %p1116_p9 = pneg %p1434_p11 }
  0x5f   : > { %p1115_p7 = scmp.ne.s32.totalorder %s1432_s23, %s1114_s8  ;;  %s1119_s21 = scalar_lea.hbm %s1583_s0, 256 }
  0x60   : > { %p1120_p1 = scmp.lt.u32.totalorder %s1432_s23, %s1583_s0  ;;  %p1121_p2 = scmp.lt.u32.totalorder %s1119_s21, %s1114_s8 }
  0x61   : > { %p1117_p12 = pnand %p1116_p9, %p1115_p7  ;;  %p1123_p8 = scmp.lt.u32.totalorder %s1114_s8, %s1432_s23 }
  0x62   : > { %p1122_p4 = por %p1121_p2, %p1120_p1 }
  0x63   : > { %p1118_p0 = pneg %p1117_p12 }
  0x64   : > { %p1124_p13 = por %p1123_p8, %p1122_p4 }
  0x66   : > { %p1125_p6 = pnand %p1124_p13, %p1118_p0 }
  0x68   : > { %1128 = shalt.err (!%p1125_p6)
}
  0x69   : > { %s1129_s20 = scalar_lea.vmem %s1438_s10, 128  ;;  %s1225_s15 = smov [#allocation2]  }
  0x6a   : > { %p1130_p10 = scmp.ne.s32.totalorder %s1438_s10, %s1129_s20  ;;  %s1134_s29 = sshll.u32 %s1225_s15, 4  ;;  %s1135_s29 = int_to_ptr.vmem [resolvable:$false] %s1134_s29 }
  0x6b   : > { %s1136_s12 = scalar_lea.vmem %s1135_s29, 256  ;;  %p1137_p12 = scmp.lt.s32.totalorder %s1438_s10, %s1135_s29 }
  0x6c   : > { %p1132_p3 = pnand %p1130_p10, %p1116_p9  ;;  %p1138_p1 = scmp.lt.s32.totalorder %s1136_s12, %s1129_s20 }
  0x6e   : > { %p1133_p7 = pneg %p1132_p3  ;;  %p1139_p2 = por %p1138_p1, %p1137_p12 }
  0x70   : > { %p1140_p4 = pnand %p1139_p2, %p1133_p7 }
  0x72   : > { %1143 = shalt.err (!%p1140_p4)
}
  0x73   : > { %954 = dma.hbm_to_vmem [thread:$0]  (!%p1434_p11), %s1432_s23, 128, %s1438_s10, %s270_s14  }
  0x74   : > { %p1604_p0 = scmp.ne.s32.totalorder %s1598_s9, 0 }
  0x75   : > { %s1468_s8 = sand.u32 (!%p1604_p0), 1, %s1210_s25   ;;  %p1605_p9 = scmp.ne.s32.totalorder (!%p1604_p0), %s1595_s30, 0 }
  0x76   : > { %289 = sbr.rel (%p1604_p0) target bundleno = 833 (0x341), region = 48  ;;  %s802_s17 = sshll.u32 (!%p1604_p0), %s1468_s8, 3 }
  0x77   : > { %s292_s21 = scalar_lea.sflag (!%p1604_p0), [#allocation3], %s1468_s8  ;;  %s1474_s16 = scalar_lea.vmem (!%p1604_p0), [#allocation2], %s802_s17 }
  0x7d   : > { %1189 = dma.done.wait (%p1605_p9), %s292_s21, 128  }
  0x7e   : > { %1191 = vsyncadd (%p1605_p9), %s292_s21, 4294967168  ;;  %p1606_p11 = scmp.eq.s32.totalorder %s1290_s28, 0 }
  0x80   : > { %1193 = dma.done.wait (%p1606_p11), [#allocation6], 2048   ;;  %p1607_p8 = pmov %p1606_p11 }
  0x82   : > { %1195 = vsyncadd (%p1607_p8), [#allocation6], 4294965248  ;;  %p1608_p13 = pmov %p1607_p8 }
  0x83   : > { %p1609_p6 = pmov %p1607_p8 }
  0x84   : > { %1197 = dma.done.wait (%p1608_p13), [#allocation9], 1024  }
  0x85   : > { %1199 = vsyncadd (%p1609_p6), [#allocation9], 4294966272  ;;  %v1226_v0 = vmov 0.0   ;;  %vm1227_vm0 = vmmov 0   ;;  %v1006_v1 = vld [vmem:[#allocation5] sm:$0xff]   ;;  %v1007_v2 = vld [vmem:[#allocation5 + $0x8] sm:$0xff]  }
  0x86   : > { %865 = vmatprep.subr.bf16.mxu0 %v1226_v0  ;;  %881 = vmatprep.mubr.msk.bf16.mxu0 %vm1227_vm0, %v1226_v0  ;;  %v1008_v3 = vld [vmem:[#allocation5 + $0x10] sm:$0xff]   ;;  %v1014_v4 = vld [vmem:[#allocation7] sm:$0xff]   ;;  %v1009_v5 = vld [vmem:[#allocation5 + $0x18] sm:$0xff]   ;;  %s835_s13 = sshll.u32 %s1290_s28, 7  ;;  %s337_s20 = scalar_lea.vmem [#allocation10], %s802_s17 }
  0x87   : > { %885 = vmatprep.subr.bf16.mxu1 %v1226_v0  ;;  %901 = vmatprep.mubr.msk.bf16.mxu1 %vm1227_vm0, %v1226_v0  ;;  %v1015_v6 = vld [vmem:[#allocation7 + $0x8] sm:$0xff]   ;;  %v1010_v7 = vld [vmem:[#allocation5 + $0x20] sm:$0xff]   ;;  %v1016_v8 = vld [vmem:[#allocation7 + $0x10] sm:$0xff]   ;;  %s694_s15 = sshll.u32 %s337_s20, 4  ;;  %s1539_s21 = scalar_lea.hbm %s1590_s7, %s835_s13  ;;  %s1541_s15 = int_to_ptr.vmem [resolvable:$true] %s694_s15 }
  0x88   : > { %866 = vmatpush3.bf16.msra.mxu0 %v1006_v1  ;;  %886 = vmatpush3.bf16.msra.mxu1 %v1014_v4  ;;  %v1011_v9 = vld [vmem:[#allocation5 + $0x28] sm:$0xff]   ;;  %v1017_v10 = vld [vmem:[#allocation7 + $0x18] sm:$0xff]   ;;  %v1012_v11 = vld [vmem:[#allocation5 + $0x30] sm:$0xff]   ;;  %s681_s28 = scalar_lea.sflag [#allocation4], %s1468_s8  ;;  %s1144_s17 = scalar_lea.vmem %s1541_s15, 128 }
  0x89   : > { %867 = vmatprep.subr.bf16.mxu0 %v1226_v0  ;;  %887 = vmatprep.subr.bf16.mxu1 %v1226_v0  ;;  %v1018_v12 = vld [vmem:[#allocation7 + $0x20] sm:$0xff]   ;;  %v1013_v13 = vld [vmem:[#allocation5 + $0x38] sm:$0xff]   ;;  %v1019_v15 = vld [vmem:[#allocation7 + $0x28] sm:$0xff]   ;;  %p1145_p10 = scmp.ne.s32.totalorder %s1541_s15, %s1144_s17 }
  0x8a   : > { %v1505_v14 = vld [vmem:[%s1474_s16] sm:$0xff]  ;;  %v1022_v19 = vld [vmem:[#allocation8] sm:$0xff]   ;;  %v1023_v20 = vld [vmem:[#allocation8 + $0x8] sm:$0xff]   ;;  %s1228_s16 = smov [#allocation10]  }
  0x8b   : > { %v340_v16 = vpack.c.bf16 %v1505_v14, %v1505_v14  ;;  %v1020_v17 = vld [vmem:[#allocation7 + $0x30] sm:$0xff]   ;;  %v1021_v18 = vld [vmem:[#allocation7 + $0x38] sm:$0xff]   ;;  %v1026_v23 = vld [vmem:[#allocation8 + $0x20] sm:$0xff]   ;;  %p1146_p3 = pnand %p1145_p10, %p1423_p5  ;;  %s1148_s30 = sshll.u32 %s1228_s16, 4  ;;  %s1149_s30 = int_to_ptr.vmem [resolvable:$false] %s1148_s30 }
  0x8c   : > { %868 = vmatpush3.bf16.msra.mxu0 %v1007_v2  ;;  %888 = vmatpush3.bf16.msra.mxu1 %v1015_v6  ;;  %v1024_v21 = vld [vmem:[#allocation8 + $0x10] sm:$0xff]   ;;  %v1025_v22 = vld [vmem:[#allocation8 + $0x18] sm:$0xff]   ;;  %v1027_v24 = vld [vmem:[#allocation8 + $0x28] sm:$0xff]   ;;  %s1150_s9 = scalar_lea.vmem %s1149_s30, 256  ;;  %p1151_p12 = scmp.lt.s32.totalorder %s1541_s15, %s1149_s30 }
  0x8d   : > { %869 = vmatprep.subr.bf16.mxu0 %v1226_v0  ;;  %889 = vmatprep.subr.bf16.mxu1 %v1226_v0  ;;  %v807_v25 = vld [vmem:[%s1585_s2] ss:$0 sm:$0xff]  ;;  %v1029_v34 = vld [vmem:[#allocation8 + $0x38] sm:$0xff]   ;;  %p1147_p7 = pneg %p1146_p3  ;;  %p1152_p1 = scmp.lt.s32.totalorder %s1150_s9, %s1144_s17 }
  0x8e   : > { %v1028_v33 = vld [vmem:[#allocation8 + $0x30] sm:$0xff]  }
  0x8f   : > { %v816_v35 = vld [vmem:[%s1587_s4] ss:$0 sm:$0xff]  ;;  %p1153_p2 = por %p1152_p1, %p1151_p12 }
  0x90   : > { %870 = vmatpush3.bf16.msra.mxu0 %v1008_v3  ;;  %890 = vmatpush3.bf16.msra.mxu1 %v1016_v8  ;;  %v825_v43 = vld [vmem:[%s1589_s6] ss:$0 sm:$0xff] }
  0x91   : > { %871 = vmatprep.subr.bf16.mxu0 %v1226_v0  ;;  %891 = vmatprep.subr.bf16.mxu1 %v1226_v0  ;;  %p1154_p4 = pnand %p1153_p2, %p1147_p7 }
  0x94   : > { %872 = vmatpush3.bf16.msra.mxu0 %v1009_v5  ;;  %892 = vmatpush3.bf16.msra.mxu1 %v1017_v10 }
  0x95   : > { %873 = vmatprep.subr.bf16.mxu0 %v1226_v0  ;;  %893 = vmatprep.subr.bf16.mxu1 %v1226_v0 }
  0x98   : > { %874 = vmatpush3.bf16.msra.mxu0 %v1010_v7  ;;  %894 = vmatpush3.bf16.msra.mxu1 %v1018_v12 }
  0x99   : > { %875 = vmatprep.subr.bf16.mxu0 %v1226_v0  ;;  %895 = vmatprep.subr.bf16.mxu1 %v1226_v0 }
  0x9c   : > { %876 = vmatpush3.bf16.msra.mxu0 %v1011_v9  ;;  %896 = vmatpush3.bf16.msra.mxu1 %v1019_v15 }
  0x9d   : > { %877 = vmatprep.subr.bf16.mxu0 %v1226_v0  ;;  %897 = vmatprep.subr.bf16.mxu1 %v1226_v0 }
  0xa0   : > { %878 = vmatpush3.bf16.msra.mxu0 %v1012_v11  ;;  %898 = vmatpush3.bf16.msra.mxu1 %v1020_v17 }
  0xa1   : > { %879 = vmatprep.subr.bf16.mxu0 %v1226_v0  ;;  %899 = vmatprep.subr.bf16.mxu1 %v1226_v0 }
  0xa4   : > { %880 = vmatpush3.bf16.msra.mxu0 %v1013_v13  ;;  %900 = vmatpush3.bf16.msra.mxu1 %v1021_v18 }
  0xa5   : > { %905 = vmatprep.subr.bf16.mxu0 %v1226_v0 }
  0xa7   : > { %882 = vmatmul.mubr.bf16.vlgmr.msra.gmra.mrb[0].mxu0 %v340_v16 }
  0xa8   : > { %921 = vmatprep.mubr.msk.bf16.mxu0 %vm1227_vm0, %v1226_v0  ;;  %906 = vmatpush3.bf16.msra.mxu0 %v1022_v19 }
  0xa9   : > { %907 = vmatprep.subr.bf16.mxu0 %v1226_v0 }
  0xac   : > { %908 = vmatpush3.bf16.msra.mxu0 %v1023_v20 }
  0xad   : > { %909 = vmatprep.subr.bf16.mxu0 %v1226_v0 }
  0xb0   : > { %910 = vmatpush3.bf16.msra.mxu0 %v1024_v21 }
  0xb1   : > { %911 = vmatprep.subr.bf16.mxu0 %v1226_v0 }
  0xb4   : > { %912 = vmatpush3.bf16.msra.mxu0 %v1025_v22 }
  0xb5   : > { %913 = vmatprep.subr.bf16.mxu0 %v1226_v0 }
  0xb8   : > { %914 = vmatpush3.bf16.msra.mxu0 %v1026_v23 }
  0xb9   : > { %915 = vmatprep.subr.bf16.mxu0 %v1226_v0 }
  0xbc   : > { %916 = vmatpush3.bf16.msra.mxu0 %v1027_v24 }
  0xbd   : > { %917 = vmatprep.subr.bf16.mxu0 %v1226_v0 }
  0xc0   : > { %918 = vmatpush3.bf16.msra.mxu0 %v1028_v33 }
  0xc1   : > { %919 = vmatprep.subr.bf16.mxu0 %v1226_v0 }
  0xc4   : > { %920 = vmatpush3.bf16.msra.mxu0 %v1029_v34 }
 0x17a   : > { %v446_v26 = vpop.f32.mrb[0].mxu0 }
 0x17b   : > { %v447_v27 = vadd.f32 %v807_v25, %v446_v26  ;;  %v883_v28 = vpop.f32.mrb[1].mxu0 }
 0x17c   : > { %v449_v29 = vpop.f32.mrb[2].mxu0 }
 0x17d   : > { %v452_v30 = vmax.f32 %v447_v27, 0.0  ;;  %v884_v31 = vpop.f32.mrb[3].mxu0 }
 0x17f   : > { %v453_v32 = vpack.c.bf16 %v452_v30, %v452_v30 }
 0x181   : > { %902 = vmatmul.mubr.bf16.vlgmr.msra.gmra.mrb[0].mxu1 %v453_v32 }
 0x254   : > { %v559_v36 = vpop.f32.mrb[0].mxu1 }
 0x255   : > { %v560_v37 = vadd.f32 %v816_v35, %v559_v36  ;;  %v903_v38 = vpop.f32.mrb[1].mxu1 }
 0x256   : > { %v562_v39 = vpop.f32.mrb[2].mxu1 }
 0x257   : > { %v565_v40 = vmax.f32 %v560_v37, 0.0  ;;  %v904_v41 = vpop.f32.mrb[3].mxu1 }
 0x259   : > { %v566_v42 = vpack.c.bf16 %v565_v40, %v565_v40 }
 0x25b   : > { %922 = vmatmul.mubr.bf16.vlgmr.msra.gmra.mrb[4].mxu0 %v566_v42 }
 0x32e   : > { %v672_v44 = vpop.f32.mrb[4].mxu0 }
 0x32f   : > { %v673_v45 = vadd.f32 %v825_v43, %v672_v44  ;;  %v923_v46 = vpop.f32.mrb[5].mxu0 }
 0x330   : > { %v675_v47 = vpop.f32.mrb[6].mxu0 }
 0x331   : > { %v678_v48 = vadd.f32 %v673_v45, %v1505_v14  ;;  %v924_v49 = vpop.f32.mrb[7].mxu0 }
 0x333   : > { %679 = vst [vmem:[%s337_s20] sm:$0xff] %v678_v48 }
 0x334   : > { %1157 = shalt.err (!%p1154_p4)
}
 0x335   : > { %s1158_s8 = scalar_lea.hbm %s1539_s21, 128  ;;  %s1162_s11 = scalar_lea.hbm %s1590_s7, 256 }
 0x336   : > { %p1159_p0 = scmp.ne.s32.totalorder %s1539_s21, %s1158_s8  ;;  %p1163_p8 = scmp.lt.u32.totalorder %s1539_s21, %s1590_s7 }
 0x337   : > { %p1164_p13 = scmp.lt.u32.totalorder %s1162_s11, %s1158_s8  ;;  %p1166_p10 = scmp.lt.u32.totalorder %s1158_s8, %s1539_s21 }
 0x338   : > { %p1160_p9 = pnand %p1159_p0, %p1423_p5 }
 0x339   : > { %p1165_p6 = por %p1164_p13, %p1163_p8 }
 0x33a   : > { %p1161_p11 = pneg %p1160_p9 }
 0x33b   : > { %p1167_p3 = por %p1166_p10, %p1165_p6 }
 0x33d   : > { %p1168_p7 = pnand %p1167_p3, %p1161_p11 }
 0x33f   : > { %1171 = shalt.err (!%p1168_p7)
}
 0x340   : > { %939 = dma.vmem_to_hbm [thread:$0]  (%p1423_p5), %s1541_s15, 128, %s1539_s21, %s681_s28  }
 0x341 PF: > { %s1610_s20 = sld [smem:[#allocation15_spill]]  ;;  %s706_s29 = sand.u32 1, %s1206_s24  }
 0x342   : > { %p1612_p1 = scmp.ge.s32.totalorder %s1218_s27, 2  ;;  %s707_s12 = scalar_lea.sflag [#allocation4], %s706_s29 }
 0x347   : > { %p1611_p12 = scmp.ne.s32.totalorder %s1610_s20, 0 }
 0x349   : > { %p956_p2 = pnand %p1612_p1, %p1611_p12 }
 0x34b   : > { %1201 = dma.done.wait (!%p956_p2), %s707_s12, 128  }
 0x34c   : > { %1203 = vsyncadd (!%p956_p2), %s707_s12, 4294967168  ;;  %p22_p4 = scmp.ge.s32.totalorder %s1409_s22, 4   ;;  %s1613_s24 = smov %s1210_s25 }
 0x34d   : > { %s1614_s25 = smov %s1214_s26  ;;  %s1615_s26 = smov %s1419_s18 }
 0x34e   : > { %s1616_s27 = smov %s1409_s22  ;;  %24 = sbr.rel (!%p22_p4) target bundleno = 7 (0x7), region = 105 }
 0x355   :  { %712 = vsyncpa [#allocation3], 1 }
 0x356   :  { %714 = vsyncpa [#allocation3 + $0x1], 1 }
 0x357   :  { %715 = vsyncpa [#allocation6], 1 }
 0x358   :  { %716 = vsyncpa [#allocation9], 1 }
 0x359   :  { %717 = vsyncpa [#allocation4], 1 }
 0x35a   :  { %719 = vsyncpa [#allocation4 + $0x1], 1 }

</bundles_post_ra>
